<compile_context>
chip_gen: v7x
topology: tpu7x:2x2x1
jax: 0.10.0
libtpu: 0.0.40
codegen_flags: <defaults>
</compile_context>

<pallas_src>
import jax
import jax.numpy as jnp
from jax.experimental import pallas as pl
from jax.experimental.pallas import tpu as pltpu

NUM_INPUTS = 2
NUM_HIDDEN = 4
NUM_OUTPUTS = 1

# Lanes per grid step. VMEM per step is only ~(IN+OUT)*TB*4B (double-buffered),
# i.e. well under 1 MiB even at 8192 — safe on v7x's smaller (64 MiB) VMEM.
_MAX_BATCH_TILE = 8192


def mlp_kernel(w1_ref, b1_ref, w2_ref, off_ref, x_ref, o_ref):
    """VPU-only fused 2-layer MLP.

    x_ref : (NUM_INPUTS, TB)  f32 VMEM, batch on the lane axis (lane-dense).
    o_ref : (NUM_OUTPUTS, TB) f32 VMEM.
    w1_ref: (NUM_INPUTS*NUM_HIDDEN,)  f32 SMEM, row-major [in, hid].
    b1_ref: (NUM_HIDDEN,)             f32 SMEM.
    w2_ref: (NUM_HIDDEN*NUM_OUTPUTS,) f32 SMEM, row-major [hid, out].
    off_ref: (NUM_OUTPUTS,) f32 SMEM — hardsigmoid offset with b2 folded in
             (0.5 + b2/6), so b2 never needs its own operand.
    """
    xs = [x_ref[i:i + 1, :] for i in range(NUM_INPUTS)]          # (1, TB) each

    # Hidden layer: unrolled scalar-broadcast FMAs + ReLU (no MXU involvement).
    hs = []
    for h in range(NUM_HIDDEN):
        acc = xs[0] * w1_ref[h]                                   # i = 0
        for i in range(1, NUM_INPUTS):
            acc = acc + xs[i] * w1_ref[i * NUM_HIDDEN + h]
        hs.append(jnp.maximum(acc + b1_ref[h], 0.0))

    # Output layer + hardsigmoid:
    #   hardsigmoid(y + b2) = clip((y + b2)/6 + 0.5, 0, 1)
    #                       = clip(y/6 + (0.5 + b2/6), 0, 1)
    for o in range(NUM_OUTPUTS):
        y = hs[0] * w2_ref[o]                                     # h = 0
        for h in range(1, NUM_HIDDEN):
            y = y + hs[h] * w2_ref[h * NUM_OUTPUTS + o]
        o_ref[o:o + 1, :] = jnp.clip(
            y * (1.0 / 6.0) + off_ref[o], 0.0, 1.0).astype(o_ref.dtype)


def _pick_batch_tile(batch, max_tile):
    if batch % 128 == 0:
        tb = min(batch, max_tile)
        tb -= tb % 128
        tb = max(tb, 128)
        while batch % tb != 0:
            tb -= 128
        return tb
    return batch  # block_shape == full array dims is always legal


def nn_forward(x, w1, b1, w2, b2, *, max_batch_tile=_MAX_BATCH_TILE):
    """x: (B, NUM_INPUTS) f32 (PyTorch layout). Returns (B, NUM_OUTPUTS) f32.

    w1: (NUM_INPUTS, NUM_HIDDEN)   (pre-transposed nn.Linear weight)
    b1: (NUM_HIDDEN,)
    w2: (NUM_HIDDEN, NUM_OUTPUTS)  (pre-transposed nn.Linear weight)
    b2: (NUM_OUTPUTS,)
    """
    B = x.shape[0]

    # Batch on the lane (last) axis -> lane-dense, unmasked loads/stores.
    x_t = x.T                                                     # (NUM_INPUTS, B)

    # Tiny params live flat in SMEM; fold b2 into the hardsigmoid offset.
    w1_flat = w1.reshape(-1)                                      # (IN*HID,)
    w2_flat = w2.reshape(-1)                                      # (HID*OUT,)
    off = 0.5 + b2.reshape(-1) * (1.0 / 6.0)                      # (OUT,)

    tb = _pick_batch_tile(B, max_batch_tile)
    grid = (B // tb,)

    smem_spec = pl.BlockSpec(memory_space=pltpu.MemorySpace.SMEM)

    flops = int(B) * (2 * NUM_INPUTS * NUM_HIDDEN
                      + 2 * NUM_HIDDEN * NUM_OUTPUTS + NUM_HIDDEN + 3)
    bytes_accessed = 4 * (int(B) * (NUM_INPUTS + NUM_OUTPUTS)
                          + w1_flat.size + b1.size + w2_flat.size + off.size)

    out_t = pl.pallas_call(
        mlp_kernel,
        out_shape=jax.ShapeDtypeStruct((NUM_OUTPUTS, B), jnp.float32),
        grid=grid,
        in_specs=[
            smem_spec,                                            # w1 (flat)
            smem_spec,                                            # b1
            smem_spec,                                            # w2 (flat)
            smem_spec,                                            # 0.5 + b2/6
            pl.BlockSpec((NUM_INPUTS, tb), lambda i: (0, i)),     # x, lane-dense
        ],
        out_specs=pl.BlockSpec((NUM_OUTPUTS, tb), lambda i: (0, i)),
        compiler_params=pltpu.CompilerParams(
            dimension_semantics=("parallel",)),                   # megacore on v7x
        cost_estimate=pl.CostEstimate(flops=flops, transcendentals=0,
                                      bytes_accessed=bytes_accessed),
    )(w1_flat, b1, w2_flat, off, x_t)

    return out_t.T                                                # (B, NUM_OUTPUTS)


def init_params(key):
    # Mimic PyTorch's uniform(-1/sqrt(fan_in), 1/sqrt(fan_in)) init.
    k1, k2, k3, k4 = jax.random.split(key, 4)
    bound1 = 1.0 / (NUM_INPUTS ** 0.5)
    bound2 = 1.0 / (NUM_HIDDEN ** 0.5)
    # Stored pre-transposed: (in_features, out_features).
    w1 = jax.random.uniform(k1, (NUM_INPUTS, NUM_HIDDEN), jnp.float32, -bound1, bound1)
    b1 = jax.random.uniform(k2, (NUM_HIDDEN,), jnp.float32, -bound1, bound1)
    w2 = jax.random.uniform(k3, (NUM_HIDDEN, NUM_OUTPUTS), jnp.float32, -bound2, bound2)
    b2 = jax.random.uniform(k4, (NUM_OUTPUTS,), jnp.float32, -bound2, bound2)
    return w1, b1, w2, b2


def reference_forward(x, w1, b1, w2, b2):
    h = jnp.maximum(x @ w1 + b1, 0.0)
    y = h @ w2 + b2
    return jnp.clip(y / 6.0 + 0.5, 0.0, 1.0)


if __name__ == "__main__":
    key = jax.random.PRNGKey(0)
    kx, kp = jax.random.split(key)
    w1, b1, w2, b2 = init_params(kp)

    # 1) Small batch (matches the module's natural usage): single full block.
    # 2) Lane-aligned batch with a forced small tile: exercises the batch grid
    #    (grid=(4,)) and the double-buffered, "parallel" pipeline path.
    for batch, max_tile in ((8, _MAX_BATCH_TILE), (512, 128)):
        x = jax.random.normal(jax.random.fold_in(kx, batch),
                              (batch, NUM_INPUTS), jnp.float32)
        out = nn_forward(x, w1, b1, w2, b2, max_batch_tile=max_tile)
        jax.block_until_ready(out)
        ref = reference_forward(x, w1, b1, w2, b2)
        assert out.shape == (batch, NUM_OUTPUTS)
        assert jnp.allclose(out, ref, atol=1e-5, rtol=1e-5)

    print("KERNEL_OK")
</pallas_src>

<mosaic_0001>
module attributes {stable_mosaic.version = 11 : i64} {
  func.func @mlp_kernel(%arg0: i32, %arg1: memref<8xf32, #tpu.memory_space<smem>>, %arg2: memref<4xf32, #tpu.memory_space<smem>>, %arg3: memref<4xf32, #tpu.memory_space<smem>>, %arg4: memref<1xf32, #tpu.memory_space<smem>>, %arg5: memref<2x8xf32, #tpu.memory_space<vmem>>, %arg6: memref<1x8xf32, #tpu.memory_space<vmem>>) attributes {dimension_semantics = [#tpu.dimension_semantics<parallel>], iteration_bounds = array<i64: 1>, scalar_prefetch = 0 : i64, scratch_operands = 0 : i64, tpu.core_type = #tpu.core_type<tc>, window_params = [{transform_indices = @transform_0, window_bounds = array<i64: 8>}, {transform_indices = @transform_1, window_bounds = array<i64: 4>}, {transform_indices = @transform_2, window_bounds = array<i64: 4>}, {transform_indices = @transform_3, window_bounds = array<i64: 1>}, {transform_indices = @transform_4, window_bounds = array<i64: 2, 8>}, {transform_indices = @transform_5, window_bounds = array<i64: 1, 8>}]} {
    %c0 = arith.constant 0 : index
    %c0_0 = arith.constant 0 : index
    %0 = vector.load %arg5[%c0, %c0_0] : memref<2x8xf32, #tpu.memory_space<vmem>>, vector<1x8xf32>
    %c1 = arith.constant 1 : index
    %c0_1 = arith.constant 0 : index
    %1 = vector.load %arg5[%c1, %c0_1] : memref<2x8xf32, #tpu.memory_space<vmem>>, vector<1x8xf32>
    %c0_2 = arith.constant 0 : index
    %2 = memref.load %arg1[%c0_2] : memref<8xf32, #tpu.memory_space<smem>>
    %3 = vector.broadcast %2 : f32 to vector<1x8xf32>
    %4 = arith.mulf %0, %3 : vector<1x8xf32>
    %c4 = arith.constant 4 : index
    %5 = memref.load %arg1[%c4] : memref<8xf32, #tpu.memory_space<smem>>
    %6 = vector.broadcast %5 : f32 to vector<1x8xf32>
    %7 = arith.mulf %1, %6 : vector<1x8xf32>
    %8 = arith.addf %4, %7 : vector<1x8xf32>
    %c0_3 = arith.constant 0 : index
    %9 = memref.load %arg2[%c0_3] : memref<4xf32, #tpu.memory_space<smem>>
    %10 = vector.broadcast %9 : f32 to vector<1x8xf32>
    %11 = arith.addf %8, %10 : vector<1x8xf32>
    %cst = arith.constant 0.000000e+00 : f32
    %12 = vector.broadcast %cst : f32 to vector<1x8xf32>
    %13 = arith.maximumf %11, %12 : vector<1x8xf32>
    %c1_4 = arith.constant 1 : index
    %14 = memref.load %arg1[%c1_4] : memref<8xf32, #tpu.memory_space<smem>>
    %15 = vector.broadcast %14 : f32 to vector<1x8xf32>
    %16 = arith.mulf %0, %15 : vector<1x8xf32>
    %c5 = arith.constant 5 : index
    %17 = memref.load %arg1[%c5] : memref<8xf32, #tpu.memory_space<smem>>
    %18 = vector.broadcast %17 : f32 to vector<1x8xf32>
    %19 = arith.mulf %1, %18 : vector<1x8xf32>
    %20 = arith.addf %16, %19 : vector<1x8xf32>
    %c1_5 = arith.constant 1 : index
    %21 = memref.load %arg2[%c1_5] : memref<4xf32, #tpu.memory_space<smem>>
    %22 = vector.broadcast %21 : f32 to vector<1x8xf32>
    %23 = arith.addf %20, %22 : vector<1x8xf32>
    %cst_6 = arith.constant 0.000000e+00 : f32
    %24 = vector.broadcast %cst_6 : f32 to vector<1x8xf32>
    %25 = arith.maximumf %23, %24 : vector<1x8xf32>
    %c2 = arith.constant 2 : index
    %26 = memref.load %arg1[%c2] : memref<8xf32, #tpu.memory_space<smem>>
    %27 = vector.broadcast %26 : f32 to vector<1x8xf32>
    %28 = arith.mulf %0, %27 : vector<1x8xf32>
    %c6 = arith.constant 6 : index
    %29 = memref.load %arg1[%c6] : memref<8xf32, #tpu.memory_space<smem>>
    %30 = vector.broadcast %29 : f32 to vector<1x8xf32>
    %31 = arith.mulf %1, %30 : vector<1x8xf32>
    %32 = arith.addf %28, %31 : vector<1x8xf32>
    %c2_7 = arith.constant 2 : index
    %33 = memref.load %arg2[%c2_7] : memref<4xf32, #tpu.memory_space<smem>>
    %34 = vector.broadcast %33 : f32 to vector<1x8xf32>
    %35 = arith.addf %32, %34 : vector<1x8xf32>
    %cst_8 = arith.constant 0.000000e+00 : f32
    %36 = vector.broadcast %cst_8 : f32 to vector<1x8xf32>
    %37 = arith.maximumf %35, %36 : vector<1x8xf32>
    %c3 = arith.constant 3 : index
    %38 = memref.load %arg1[%c3] : memref<8xf32, #tpu.memory_space<smem>>
    %39 = vector.broadcast %38 : f32 to vector<1x8xf32>
    %40 = arith.mulf %0, %39 : vector<1x8xf32>
    %c7 = arith.constant 7 : index
    %41 = memref.load %arg1[%c7] : memref<8xf32, #tpu.memory_space<smem>>
    %42 = vector.broadcast %41 : f32 to vector<1x8xf32>
    %43 = arith.mulf %1, %42 : vector<1x8xf32>
    %44 = arith.addf %40, %43 : vector<1x8xf32>
    %c3_9 = arith.constant 3 : index
    %45 = memref.load %arg2[%c3_9] : memref<4xf32, #tpu.memory_space<smem>>
    %46 = vector.broadcast %45 : f32 to vector<1x8xf32>
    %47 = arith.addf %44, %46 : vector<1x8xf32>
    %cst_10 = arith.constant 0.000000e+00 : f32
    %48 = vector.broadcast %cst_10 : f32 to vector<1x8xf32>
    %49 = arith.maximumf %47, %48 : vector<1x8xf32>
    %c0_11 = arith.constant 0 : index
    %50 = memref.load %arg3[%c0_11] : memref<4xf32, #tpu.memory_space<smem>>
    %51 = vector.broadcast %50 : f32 to vector<1x8xf32>
    %52 = arith.mulf %13, %51 : vector<1x8xf32>
    %c1_12 = arith.constant 1 : index
    %53 = memref.load %arg3[%c1_12] : memref<4xf32, #tpu.memory_space<smem>>
    %54 = vector.broadcast %53 : f32 to vector<1x8xf32>
    %55 = arith.mulf %25, %54 : vector<1x8xf32>
    %56 = arith.addf %52, %55 : vector<1x8xf32>
    %c2_13 = arith.constant 2 : index
    %57 = memref.load %arg3[%c2_13] : memref<4xf32, #tpu.memory_space<smem>>
    %58 = vector.broadcast %57 : f32 to vector<1x8xf32>
    %59 = arith.mulf %37, %58 : vector<1x8xf32>
    %60 = arith.addf %56, %59 : vector<1x8xf32>
    %c3_14 = arith.constant 3 : index
    %61 = memref.load %arg3[%c3_14] : memref<4xf32, #tpu.memory_space<smem>>
    %62 = vector.broadcast %61 : f32 to vector<1x8xf32>
    %63 = arith.mulf %49, %62 : vector<1x8xf32>
    %64 = arith.addf %60, %63 : vector<1x8xf32>
    %cst_15 = arith.constant 0.166666672 : f32
    %65 = vector.broadcast %cst_15 : f32 to vector<1x8xf32>
    %66 = arith.mulf %64, %65 : vector<1x8xf32>
    %c0_16 = arith.constant 0 : index
    %67 = memref.load %arg4[%c0_16] : memref<1xf32, #tpu.memory_space<smem>>
    %68 = vector.broadcast %67 : f32 to vector<1x8xf32>
    %69 = arith.addf %66, %68 : vector<1x8xf32>
    %cst_17 = arith.constant 0.000000e+00 : f32
    %cst_18 = arith.constant 1.000000e+00 : f32
    %70 = vector.broadcast %cst_17 : f32 to vector<1x8xf32>
    %71 = arith.maximumf %70, %69 : vector<1x8xf32>
    %72 = vector.broadcast %cst_18 : f32 to vector<1x8xf32>
    %73 = arith.minimumf %72, %71 : vector<1x8xf32>
    %c0_19 = arith.constant 0 : index
    %c0_20 = arith.constant 0 : index
    %74 = vector.load %arg6[%c0_19, %c0_20] : memref<1x8xf32, #tpu.memory_space<vmem>>, vector<1x8xf32>
    tpu.vector_store %arg6[%c0_19, %c0_20], %73 {strides = array<i32>} : memref<1x8xf32, #tpu.memory_space<vmem>>, vector<1x8xf32>,
    return
  }
  func.func @transform_0(%arg0: i32) -> i32 {
    %c0_i32 = arith.constant 0 : i32
    %c0_i32_0 = arith.constant 0 : i32
    return %c0_i32 : i32
  }
  func.func @transform_1(%arg0: i32) -> i32 {
    %c0_i32 = arith.constant 0 : i32
    %c0_i32_0 = arith.constant 0 : i32
    return %c0_i32 : i32
  }
  func.func @transform_2(%arg0: i32) -> i32 {
    %c0_i32 = arith.constant 0 : i32
    %c0_i32_0 = arith.constant 0 : i32
    return %c0_i32 : i32
  }
  func.func @transform_3(%arg0: i32) -> i32 {
    %c0_i32 = arith.constant 0 : i32
    %c0_i32_0 = arith.constant 0 : i32
    return %c0_i32 : i32
  }
  func.func @transform_4(%arg0: i32) -> (i32, i32) {
    %c0_i32 = arith.constant 0 : i32
    %c0_i32_0 = arith.constant 0 : i32
    return %c0_i32, %arg0 : i32, i32
  }
  func.func @transform_5(%arg0: i32) -> (i32, i32) {
    %c0_i32 = arith.constant 0 : i32
    %c0_i32_0 = arith.constant 0 : i32
    return %c0_i32, %arg0 : i32, i32
  }
}

</mosaic_0001>

<bundles_post_ra>
// kernel: tpu_custom_call.1
= control target key start
LH: loop header
LB: loop body
LE: loop exit
PB: predicated region body
PF: predicated region fallthrough
CT: control target
= control target key end

     0   :  { %11 = vsyncpa [#allocation5], 0  ;;  %s312_s0 = inlined_call_operand.vmem [shape: f32[8], index: 0, kind: input, shape index: {}]   ;;  %s313_s1 = inlined_call_operand.vmem [shape: f32[4], index: 1, kind: input, shape index: {}]   ;;  %s314_s2 = inlined_call_operand.vmem [shape: f32[4], index: 2, kind: input, shape index: {}]   ;;  %s315_s3 = inlined_call_operand.<no memory space> [shape: f32[1], index: 3, kind: input, shape index: {}]   ;;  %s316_s4 = inlined_call_operand.vmem [shape: f32[2,8], index: 4, kind: input, shape index: {}]   ;;  %s317_s5 = inlined_call_operand.hbm [shape: f32[1,8], index: 5, kind: output, shape index: {}]  }
   0x1   :  { %12 = vsyncpa [#allocation7], 0  ;;  %s30_s20 = sshll.u32 %s313_s1, 4  ;;  %s31_s20 = int_to_ptr.vmem [resolvable:$true] %s30_s20 }
   0x2   :  { %13 = vsyncpa [#allocation4], 0  ;;  %s20_s23 = sshll.u32 %s312_s0, 4  ;;  %s160_s24 = scalar_lea.vmem %s31_s20, 16  ;;  %s21_s23 = int_to_ptr.vmem [resolvable:$true] %s20_s23 }
   0x3   :  { %p161_p0 = scmp.ne.s32.totalorder %s31_s20, %s160_s24  ;;  %p165_p1 = scmp.lt.s32.totalorder %s31_s20, %s31_s20 }
   0x4   :  { %p166_p2 = scmp.lt.s32.totalorder %s160_s24, %s160_s24 }
   0x6   :  { %p167_p3 = por %p166_p2, %p165_p1 }
   0x8   :  { %p168_p4 = pnand %p167_p3, %p161_p0 }
   0xa   :  { %171 = shalt.err (!%p168_p4)
}
   0xb   :  { %s224_s25 = smov [#allocation6]   ;;  %s172_s26 = scalar_lea.vmem %s21_s23, 16 }
   0xc   :  { %33 = dma.vmem_to_smem %s31_s20, 16, %s224_s25, [#allocation7]  }
   0xd   :  { %p173_p5 = scmp.ne.s32.totalorder %s21_s23, %s172_s26  ;;  %p177_p6 = scmp.lt.s32.totalorder %s21_s23, %s21_s23 }
   0xe   :  { %p178_p7 = scmp.lt.s32.totalorder %s172_s26, %s172_s26 }
  0x10   :  { %p179_p8 = por %p178_p7, %p177_p6 }
  0x12   :  { %p180_p9 = pnand %p179_p8, %p173_p5 }
  0x14   :  { %183 = shalt.err (!%p180_p9)
}
  0x15   :  { %s225_s1 = smov [#allocation3]   ;;  %s40_s28 = sshll.u32 %s314_s2, 4  ;;  %s41_s28 = int_to_ptr.vmem [resolvable:$true] %s40_s28 }
  0x16   :  { %23 = dma.vmem_to_smem %s21_s23, 16, %s225_s1, [#allocation5]  }
  0x17   :  { %s184_s29 = scalar_lea.vmem %s41_s28, 16  ;;  %p189_p11 = scmp.lt.s32.totalorder %s41_s28, %s41_s28 }
  0x18   :  { %p185_p10 = scmp.ne.s32.totalorder %s41_s28, %s184_s29  ;;  %p190_p12 = scmp.lt.s32.totalorder %s184_s29, %s184_s29 }
  0x1a   :  { %p191_p13 = por %p190_p12, %p189_p11 }
  0x1c   :  { %p192_p0 = pnand %p191_p13, %p185_p10 }
  0x1e   :  { %195 = shalt.err (!%p192_p0)
}
  0x1f   :  { %s226_s30 = smov [#allocation8]  }
  0x20   :  { %43 = dma.vmem_to_smem %s41_s28, 16, %s226_s30, [#allocation7]  }
  0x21   :  { %218 = dma.done.wait [#allocation5], 16  }
  0x22   :  { %219 = vsyncadd [#allocation5], 4294967280 }
  0x23   :  { %220 = dma.done.wait [#allocation7], 32  }
  0x24   :  { %221 = vsyncadd [#allocation7], 4294967264 }
  0x25   :  { %57 = sfence }
  0x26   :  { %s60_s6 = sld [smem:[#allocation3]]  ;;  %s143_s7 = sld [smem:[#allocation3 + $0x4]]  ;;  %v58_v0 = vld [vmem:[%s316_s4] sm:$0x1]  ;;  %v59_v1 = vld [vmem:[%s316_s4 + $0x1] sm:$0x1]  ;;  %v121_v45 = vstv %s315_s3 }
  0x27   :  { %s267_s8 = sld [smem:[#allocation6]]  ;;  %s144_s2 = sld [smem:[#allocation3 + $0x1]]  ;;  %vm125_vm0 = vcmask 57344  }
  0x28   :  { %s145_s9 = sld [smem:[#allocation3 + $0x5]]  ;;  %s269_s10 = sld [smem:[#allocation6 + $0x1]] }
  0x29   :  { %s147_s11 = sld [smem:[#allocation3 + $0x2]]  ;;  %s148_s14 = sld [smem:[#allocation3 + $0x6]] }
  0x2a   :  { %s274_s15 = sld [smem:[#allocation6 + $0x2]]  ;;  %s150_s18 = sld [smem:[#allocation3 + $0x3]] }
  0x2b   :  { %s151_s19 = sld [smem:[#allocation3 + $0x7]]  ;;  %s279_s20 = sld [smem:[#allocation6 + $0x3]] }
  0x2c   :  { %v61_v2 = vstv %s60_s6  ;;  %s281_s21 = sld [smem:[#allocation8]]  ;;  %v64_v4 = vstv %s143_s7  ;;  %s283_s22 = sld [smem:[#allocation8 + $0x1]] }
  0x2d   :  { %v62_v3 = vmul.f32 %v61_v2, %v58_v0  ;;  %v65_v5 = vmul.f32 %v64_v4, %v59_v1  ;;  %v72_v6 = vstv %s144_s2  ;;  %s285_s23 = sld [smem:[#allocation8 + $0x2]]  ;;  %v68_v8 = vstv %s267_s8  ;;  %s288_s4 = sld [smem:[#allocation8 + $0x3]] }
  0x2e   :  { %v75_v7 = vstv %s145_s9  ;;  %v73_v9 = vmul.f32 %v72_v6, %v58_v0  ;;  %v79_v13 = vstv %s269_s10  ;;  %s227_s26 = smov [#allocation9]  }
  0x2f   :  { %v76_v10 = vmul.f32 %v75_v7, %v59_v1  ;;  %v83_v11 = vstv %s147_s11  ;;  %v66_v12 = vadd.f32 %v65_v5, %v62_v3  ;;  %v86_v15 = vstv %s148_s14  ;;  %s133_s1 = sshll.u32 %s227_s26, 4  ;;  %s134_s1 = int_to_ptr.vmem [resolvable:$true] %s133_s1 }
  0x30   :  { %v84_v14 = vmul.f32 %v83_v11, %v58_v0  ;;  %v87_v17 = vmul.f32 %v86_v15, %v59_v1  ;;  %v94_v18 = vstv %s150_s18  ;;  %v90_v21 = vstv %s274_s15  ;;  %s196_s0 = scalar_lea.vmem %s134_s1, 16  ;;  %s200_s27 = scalar_lea.vmem %s134_s1, 32 }
  0x31   :  { %v77_v16 = vadd.f32 %v76_v10, %v73_v9  ;;  %v97_v19 = vstv %s151_s19  ;;  %v69_v20 = vadd.f32 %v68_v8, %v66_v12  ;;  %v95_v22 = vmul.f32 %v94_v18, %v58_v0  ;;  %p197_p1 = scmp.ne.s32.totalorder %s134_s1, %s196_s0  ;;  %p201_p2 = scmp.lt.s32.totalorder %s134_s1, %s134_s1 }
  0x32   :  { %v98_v23 = vmul.f32 %v97_v19, %v59_v1  ;;  %v88_v25 = vadd.f32 %v87_v17, %v84_v14  ;;  %v101_v26 = vstv %s279_s20  ;;  %v105_v27 = vstv %s281_s21  ;;  %p202_p3 = scmp.lt.s32.totalorder %s200_s27, %s196_s0 }
  0x33   :  { %v80_v24 = vadd.f32 %v79_v13, %v77_v16  ;;  %v70_v28 = vmax.f32 %v69_v20, 0.0  ;;  %v108_v30 = vstv %s283_s22  ;;  %v112_v35 = vstv %s285_s23 }
  0x34   :  { %v99_v29 = vadd.f32 %v98_v23, %v95_v22  ;;  %v91_v32 = vadd.f32 %v90_v21, %v88_v25  ;;  %v116_v38 = vstv %s288_s4  ;;  %p203_p4 = por %p202_p3, %p201_p2 }
  0x35   :  { %v81_v31 = vmax.f32 %v80_v24, 0.0  ;;  %v106_v34 = vmul.f32 %v105_v27, %v70_v28 }
  0x36   :  { %v102_v33 = vadd.f32 %v101_v26, %v99_v29  ;;  %v92_v36 = vmax.f32 %v91_v32, 0.0  ;;  %p204_p5 = pnand %p203_p4, %p197_p1 }
  0x37   :  { %v109_v37 = vmul.f32 %v108_v30, %v81_v31 }
  0x38   :  { %v103_v39 = vmax.f32 %v102_v33, 0.0  ;;  %v113_v41 = vmul.f32 %v112_v35, %v92_v36 }
  0x39   :  { %v110_v40 = vadd.f32 %v109_v37, %v106_v34 }
  0x3a   :  { %v117_v42 = vmul.f32 %v116_v38, %v103_v39 }
  0x3b   :  { %v114_v43 = vadd.f32 %v113_v41, %v110_v40 }
  0x3d   :  { %v118_v44 = vadd.f32 %v117_v42, %v114_v43 }
  0x3f   :  { %v119_v46 = vmul.f32 0.16666667, %v118_v44 }
  0x41   :  { %v122_v47 = vadd.f32 %v121_v45, %v119_v46 }
  0x43   :  { %v123_v48 = vmax.f32 %v122_v47, 0.0 }
  0x45   :  { %v124_v49 = vmin.f32 %v123_v48, 1.0 }
  0x47   :  { %126 = vst.msk [vmem:[#allocation9] sm:$0x1] %vm125_vm0, %v124_v49 }
  0x48   :  { %207 = shalt.err (!%p204_p5)
}
  0x49   :  { %s208_s3 = scalar_lea.hbm %s317_s5, 16 }
  0x4a   :  { %p209_p6 = scmp.ne.s32.totalorder %s317_s5, %s208_s3  ;;  %p212_p7 = scmp.lt.u32.totalorder %s208_s3, %s317_s5 }
  0x4c   :  { %p214_p8 = pnand %p212_p7, %p209_p6 }
  0x4e   :  { %217 = shalt.err (!%p214_p8)
}
  0x4f   :  { %136 = dma.vmem_to_hbm [thread:$0]  %s134_s1, 16, %s317_s5, [#allocation4]  }
  0x50   :  { %222 = dma.done.wait [#allocation4], 16  }
  0x51   :  { %223 = vsyncadd [#allocation4], 4294967280 }
  0x52   :  { %140 = vsyncpa [#allocation4], 1 }
  0x53   :  { %141 = vsyncpa [#allocation5], 1 }
  0x54   :  { %142 = vsyncpa [#allocation7], 1 }

</bundles_post_ra>
